<compile_context>
chip_gen: v7x
topology: tpu7x:2x2x1
jax: 0.10.0
libtpu: 0.0.40
codegen_flags: <defaults>
</compile_context>

<pallas_src>
import functools

import jax
import jax.numpy as jnp
from jax.experimental import pallas as pl
from jax.experimental.pallas import tpu as pltpu


# ---------------------------------------------------------------------------
# Tile-size selection (per-generation VMEM budget)
# ---------------------------------------------------------------------------

def _default_vmem_limit_bytes():
    """VMEM limit for the pallas_call: ~40 MiB on v7x (64 MiB VMEM/TC),
    ~80 MiB on v5e/v6e (128 MiB), leaving headroom for Mosaic scratch."""
    try:
        cap = int(pltpu.get_tpu_info().vmem_capacity_bytes)
    except Exception:
        cap = 64 << 20                      # conservative (v7x-sized) fallback
    return min((cap * 5) // 8, 100 << 20)


def _round_down(x, m):
    return (x // m) * m


def _select_tl(L, per_lane_bytes, budget_bytes, min_tl, hard_cap_bytes):
    """Pick the L-axis tile: big enough to amortize the ~0.35us/grid-step
    overhead and keep contiguous HBM runs >= ~2 KiB, small enough that
    double-buffered blocks stay inside the per-step VMEM budget."""
    per_lane_bytes = max(per_lane_bytes, 1)
    tl_budget = max(128, budget_bytes // per_lane_bytes)
    if L <= max(tl_budget, min_tl):
        tl = L                               # full extent: legal, no masked store
    else:
        tl = max(min_tl, _round_down(tl_budget, 128))
        # Prefer a tile that divides L evenly (lane-dense unmasked last store).
        lo = max(min_tl, tl - 32 * 128)
        for cand in range(tl, lo - 1, -128):
            if L % cand == 0:
                tl = cand
                break
    # Never let a single step's blocks exceed the VMEM limit outright.
    cap = max(128, _round_down(hard_cap_bytes // per_lane_bytes, 128))
    if L > cap:
        tl = min(tl, cap)
    return tl


def _select_tb(B, row_in_bytes, per_step_bytes, budget_bytes):
    """Batch several (1, C, tl) rows per block when C is small, so each grid
    step DMAs ~1-4 MiB instead of tens of KiB."""
    if row_in_bytes >= (512 << 10):
        return 1
    tb = min(B, max(1, (2 << 20) // max(row_in_bytes, 1)))
    tb = max(1, min(tb, budget_bytes // max(per_step_bytes, 1)))
    while tb > 1 and B % tb != 0:            # prefer an even split of the batch
        tb -= 1
    return tb


# ---------------------------------------------------------------------------
# Channel LayerNorm on NCL tensors
# ---------------------------------------------------------------------------

def _layernorm_kernel(x_ref, g_ref, b_ref, o_ref, *, eps):
    # x_ref / o_ref block: (TB, C, TL); g_ref / b_ref: (1, C, 1) f32 (resident).
    xf = x_ref[...].astype(jnp.float32)
    # One-pass statistics over the channel axis (fully inside the block).
    # NOTE: E[x^2]-E[x]^2 is less stable than the two-pass form for inputs with
    # a large common mean; the clamp guards cancellation (fine for ~zero-mean
    # prenorm activations).
    m = jnp.mean(xf, axis=1, keepdims=True)            # (TB, 1, TL)
    ms = jnp.mean(xf * xf, axis=1, keepdims=True)      # (TB, 1, TL)
    var = jnp.maximum(ms - m * m, 0.0)
    inv = jax.lax.rsqrt(var + eps)
    if o_ref.dtype == jnp.bfloat16:
        # bf16 apply (v6e/v7x): stats stay f32, the full-tile affine runs on the
        # bf16 VALU -> half the elementwise slot pressure, fewer f32 temporaries.
        xhat = ((xf - m) * inv).astype(jnp.bfloat16)
        o_ref[...] = (xhat * g_ref[...].astype(jnp.bfloat16)
                      + b_ref[...].astype(jnp.bfloat16))
    else:
        o_ref[...] = ((xf - m) * inv * g_ref[...] + b_ref[...]).astype(o_ref.dtype)


def layer_norm_ncl(x, gamma, beta, eps=1e-5,
                   block_budget_bytes=None, vmem_limit_bytes=None):
    """Channel LayerNorm on an NCL tensor.

    Matches the PyTorch module's LayerNorm.forward
    (permute(0,2,1) -> F.layer_norm over C -> permute back) computed directly
    over the channel axis.  x: (B, C, L); gamma, beta: (C,).  Stats in f32;
    output dtype == input dtype.
    """
    B, C, L = x.shape
    in_bytes = x.dtype.itemsize
    out_bytes = in_bytes
    if vmem_limit_bytes is None:
        vmem_limit_bytes = _default_vmem_limit_bytes()
    if block_budget_bytes is None:
        block_budget_bytes = (vmem_limit_bytes * 5) // 8   # ~62% of the limit

    # Bytes per L-lane per batch row: double-buffered in + out blocks + f32 temp.
    per_lane = C * (2 * (in_bytes + out_bytes) + 4)
    min_tl = 1024 if in_bytes < 4 else 512
    tl = _select_tl(L, per_lane, block_budget_bytes, min_tl, vmem_limit_bytes)
    tb = _select_tb(B, C * tl * in_bytes, tl * per_lane, block_budget_bytes)

    grid = (pl.cdiv(B, tb), pl.cdiv(L, tl))
    g3 = gamma.reshape(1, C, 1).astype(jnp.float32)
    b3 = beta.reshape(1, C, 1).astype(jnp.float32)

    return pl.pallas_call(
        functools.partial(_layernorm_kernel, eps=eps),
        out_shape=jax.ShapeDtypeStruct((B, C, L), x.dtype),
        grid_spec=pltpu.PrefetchScalarGridSpec(
            num_scalar_prefetch=0,
            grid=grid,
            in_specs=[
                pl.BlockSpec((tb, C, tl), lambda b, l: (b, 0, l)),
                pl.BlockSpec((1, C, 1), lambda b, l: (0, 0, 0)),   # resident
                pl.BlockSpec((1, C, 1), lambda b, l: (0, 0, 0)),   # resident
            ],
            out_specs=pl.BlockSpec((tb, C, tl), lambda b, l: (b, 0, l)),
        ),
        compiler_params=pltpu.CompilerParams(
            dimension_semantics=("parallel", "parallel"),
            vmem_limit_bytes=vmem_limit_bytes,
        ),
    )(x, g3, b3)


# ---------------------------------------------------------------------------
# Fused prenorm + 1x1 projection (LayerNorm -> Conv1d(k=1), e.g. to_qkv / wi)
# ---------------------------------------------------------------------------

def _layernorm_proj_kernel(x_ref, g_ref, b_ref, w_ref, bias_ref, o_ref, *, eps):
    # x_ref: (C, TL); g/b: (C, 1); w: (OC, C); bias: (OC, 1); o: (OC, TL).
    xf = x_ref[...].astype(jnp.float32)
    m = jnp.mean(xf, axis=0, keepdims=True)
    ms = jnp.mean(xf * xf, axis=0, keepdims=True)
    var = jnp.maximum(ms - m * m, 0.0)
    inv = jax.lax.rsqrt(var + eps)
    xn = (xf - m) * inv * g_ref[...] + b_ref[...]                  # (C, TL) f32
    w_ = w_ref[...]
    rhs = xn if w_.dtype == jnp.float32 else xn.astype(w_.dtype)
    acc = jnp.dot(w_, rhs, preferred_element_type=jnp.float32)     # MXU, (OC, TL)
    acc = acc + bias_ref[...]
    o_ref[...] = acc.astype(o_ref.dtype)


def layer_norm_proj_ncl(x, gamma, beta, w, bias=None, eps=1e-5,
                        block_budget_bytes=None, vmem_limit_bytes=None):
    """Fused channel-LayerNorm + pointwise (1x1) projection:
        out[b, oc, l] = sum_c w[oc, c] * LN(x)[b, c, l] + bias[oc]
    i.e. the prenorm + Conv1d(kernel=1) opening of LinearAttention / FeedForward.
    x: (B, C, L); w: (OC, C); bias: (OC,) or None."""
    B, C, L = x.shape
    OC = w.shape[0]
    in_bytes = x.dtype.itemsize
    out_bytes = in_bytes
    if vmem_limit_bytes is None:
        vmem_limit_bytes = _default_vmem_limit_bytes()
    if block_budget_bytes is None:
        block_budget_bytes = (vmem_limit_bytes * 5) // 8

    per_lane = 2 * C * in_bytes + 2 * OC * out_bytes + 4 * (C + OC)
    min_tl = 1024 if in_bytes < 4 else 512
    tl = _select_tl(L, per_lane, block_budget_bytes, min_tl, vmem_limit_bytes)
    grid = (B, pl.cdiv(L, tl))

    g2 = gamma.reshape(C, 1).astype(jnp.float32)
    b2 = beta.reshape(C, 1).astype(jnp.float32)
    bias_arr = (jnp.zeros((OC, 1), jnp.float32) if bias is None
                else bias.reshape(OC, 1).astype(jnp.float32))

    return pl.pallas_call(
        functools.partial(_layernorm_proj_kernel, eps=eps),
        out_shape=jax.ShapeDtypeStruct((B, OC, L), x.dtype),
        grid_spec=pltpu.PrefetchScalarGridSpec(
            num_scalar_prefetch=0,
            grid=grid,
            in_specs=[
                pl.BlockSpec((pl.Squeezed(), C, tl), lambda b, l: (b, 0, l)),
                pl.BlockSpec((C, 1), lambda b, l: (0, 0)),    # gamma, resident
                pl.BlockSpec((C, 1), lambda b, l: (0, 0)),    # beta, resident
                pl.BlockSpec((OC, C), lambda b, l: (0, 0)),   # weight, resident
                pl.BlockSpec((OC, 1), lambda b, l: (0, 0)),   # bias, resident
            ],
            out_specs=pl.BlockSpec((pl.Squeezed(), OC, tl), lambda b, l: (b, 0, l)),
        ),
        compiler_params=pltpu.CompilerParams(
            dimension_semantics=("parallel", "parallel"),
            vmem_limit_bytes=vmem_limit_bytes,
        ),
    )(x, g2, b2, w, bias_arr)


# ---------------------------------------------------------------------------
# Pure-JAX references + tests
# ---------------------------------------------------------------------------

def _layer_norm_ncl_ref(x, gamma, beta, eps):
    xt = jnp.transpose(x, (0, 2, 1)).astype(jnp.float32)        # (B, L, C)
    mean = jnp.mean(xt, axis=-1, keepdims=True)
    var = jnp.mean((xt - mean) ** 2, axis=-1, keepdims=True)    # biased, like F.layer_norm
    y = (xt - mean) / jnp.sqrt(var + eps) * gamma.astype(jnp.float32) \
        + beta.astype(jnp.float32)
    return jnp.transpose(y, (0, 2, 1)).astype(x.dtype)


def _layer_norm_proj_ref(x, gamma, beta, w, bias, eps):
    xn = _layer_norm_ncl_ref(x, gamma, beta, eps).astype(jnp.float32)
    y = jnp.einsum("oc,bcl->bol", w.astype(jnp.float32), xn)
    if bias is not None:
        y = y + bias.astype(jnp.float32)[None, :, None]
    return y.astype(x.dtype)


def _run_norm_case(key, B, C, L, dtype, atol, rtol, block_budget_bytes=None):
    x = jax.random.normal(key, (B, C, L), dtype=jnp.float32).astype(dtype)
    gamma = jnp.linspace(0.5, 1.5, C, dtype=jnp.float32)
    beta = jnp.linspace(-0.25, 0.25, C, dtype=jnp.float32)
    out = layer_norm_ncl(x, gamma, beta, eps=1e-5,
                         block_budget_bytes=block_budget_bytes)
    out = jax.block_until_ready(out)
    ref = _layer_norm_ncl_ref(x, gamma, beta, eps=1e-5)
    assert out.shape == (B, C, L) and out.dtype == x.dtype
    ok = jnp.allclose(out.astype(jnp.float32), ref.astype(jnp.float32),
                      atol=atol, rtol=rtol)
    assert ok, f"layernorm mismatch (B={B},C={C},L={L},{dtype})"


def _run_proj_case(key, B, C, OC, L, with_bias, atol, rtol):
    kx, kw, kb = jax.random.split(key, 3)
    x = jax.random.normal(kx, (B, C, L), dtype=jnp.float32)
    gamma = jnp.linspace(0.5, 1.5, C, dtype=jnp.float32)
    beta = jnp.linspace(-0.25, 0.25, C, dtype=jnp.float32)
    w = 0.3 * jax.random.normal(kw, (OC, C), dtype=jnp.float32)
    bias = (0.1 * jax.random.normal(kb, (OC,), dtype=jnp.float32)
            if with_bias else None)
    out = layer_norm_proj_ncl(x, gamma, beta, w, bias, eps=1e-5)
    out = jax.block_until_ready(out)
    ref = _layer_norm_proj_ref(x, gamma, beta, w, bias, eps=1e-5)
    assert out.shape == (B, OC, L) and out.dtype == x.dtype
    ok = jnp.allclose(out, ref, atol=atol, rtol=rtol)
    assert ok, f"fused norm+proj mismatch (B={B},C={C},OC={OC},L={L})"


if __name__ == "__main__":
    key = jax.random.PRNGKey(0)
    keys = jax.random.split(key, 8)

    # 1) Module-consistent small shape: (b*t, dim, h*w) slab, single full tile.
    _run_norm_case(keys[0], B=2, C=4, L=16, dtype=jnp.float32, atol=1e-4, rtol=1e-4)
    # 2) C not a multiple of 8 (sublane masking) + odd L, full-extent tile.
    _run_norm_case(keys[1], B=2, C=5, L=130, dtype=jnp.float32, atol=1e-4, rtol=1e-4)
    # 3) Budget-forced multiple L tiles, divisor search picks tl=768 (unmasked).
    _run_norm_case(keys[2], B=2, C=8, L=1536, dtype=jnp.float32, atol=1e-4, rtol=1e-4,
                   block_budget_bytes=160_000)
    # 4) Partial (masked) last L tile.
    _run_norm_case(keys[3], B=2, C=8, L=1000, dtype=jnp.float32, atol=1e-4, rtol=1e-4,
                   block_budget_bytes=96_000)
    # 5) Small-C batch tiling (TB>1) so blocks reach a sane DMA size.
    _run_norm_case(keys[4], B=4, C=8, L=256, dtype=jnp.float32, atol=1e-4, rtol=1e-4)
    # 6) bf16 in/out: f32 stats + bf16 apply, multiple L tiles.
    _run_norm_case(keys[5], B=2, C=8, L=2560, dtype=jnp.bfloat16, atol=3e-2, rtol=3e-2,
                   block_budget_bytes=192_000)
    # 7) Fused prenorm + 1x1 projection (LinearAttention.to_qkv shape, no bias).
    _run_proj_case(keys[6], B=2, C=8, OC=24, L=64, with_bias=False, atol=1e-3, rtol=1e-3)
    # 8) Fused prenorm + 1x1 projection with bias (FeedForward.wi shape).
    _run_proj_case(keys[7], B=2, C=4, OC=16, L=48, with_bias=True, atol=1e-3, rtol=1e-3)

    print("KERNEL_OK")
</pallas_src>

<mosaic_0001>
module attributes {stable_mosaic.version = 11 : i64} {
  func.func @_layernorm_kernel(%arg0: i32, %arg1: i32, %arg2: memref<2x4x16xf32, #tpu.memory_space<vmem>>, %arg3: memref<1x4x1xf32, #tpu.memory_space<vmem>>, %arg4: memref<1x4x1xf32, #tpu.memory_space<vmem>>, %arg5: memref<2x4x16xf32, #tpu.memory_space<vmem>>) attributes {dimension_semantics = [#tpu.dimension_semantics<parallel>, #tpu.dimension_semantics<parallel>], iteration_bounds = array<i64: 1, 1>, scalar_prefetch = 0 : i64, scratch_operands = 0 : i64, tpu.core_type = #tpu.core_type<tc>, window_params = [{transform_indices = @transform_0, window_bounds = array<i64: 2, 4, 16>}, {pipeline_mode = #tpu.pipeline_mode<synchronous>, transform_indices = @transform_1, window_bounds = array<i64: 1, 4, 1>}, {pipeline_mode = #tpu.pipeline_mode<synchronous>, transform_indices = @transform_2, window_bounds = array<i64: 1, 4, 1>}, {transform_indices = @transform_3, window_bounds = array<i64: 2, 4, 16>}]} {
    %c0 = arith.constant 0 : index
    %c0_0 = arith.constant 0 : index
    %c0_1 = arith.constant 0 : index
    %0 = vector.load %arg2[%c0, %c0_0, %c0_1] : memref<2x4x16xf32, #tpu.memory_space<vmem>>, vector<2x4x16xf32>
    %cst = arith.constant dense<0.000000e+00> : vector<2x16xf32>
    %1 = vector.multi_reduction <add>, %0, %cst [1] : vector<2x4x16xf32> to vector<2x16xf32>
    %2 = vector.shape_cast %1 : vector<2x16xf32> to vector<2x1x16xf32>
    %cst_2 = arith.constant 4.000000e+00 : f32
    %3 = vector.broadcast %cst_2 : f32 to vector<2x1x16xf32>
    %4 = arith.divf %2, %3 : vector<2x1x16xf32>
    %5 = arith.mulf %0, %0 : vector<2x4x16xf32>
    %cst_3 = arith.constant dense<0.000000e+00> : vector<2x16xf32>
    %6 = vector.multi_reduction <add>, %5, %cst_3 [1] : vector<2x4x16xf32> to vector<2x16xf32>
    %7 = vector.shape_cast %6 : vector<2x16xf32> to vector<2x1x16xf32>
    %cst_4 = arith.constant 4.000000e+00 : f32
    %8 = vector.broadcast %cst_4 : f32 to vector<2x1x16xf32>
    %9 = arith.divf %7, %8 : vector<2x1x16xf32>
    %10 = arith.mulf %4, %4 : vector<2x1x16xf32>
    %11 = arith.subf %9, %10 : vector<2x1x16xf32>
    %cst_5 = arith.constant 0.000000e+00 : f32
    %12 = vector.broadcast %cst_5 : f32 to vector<2x1x16xf32>
    %13 = arith.maximumf %11, %12 : vector<2x1x16xf32>
    %cst_6 = arith.constant 9.99999974E-6 : f32
    %14 = vector.broadcast %cst_6 : f32 to vector<2x1x16xf32>
    %15 = arith.addf %13, %14 : vector<2x1x16xf32>
    %16 = math.rsqrt %15 : vector<2x1x16xf32>
    %17 = vector.broadcast %4 : vector<2x1x16xf32> to vector<2x4x16xf32>
    %18 = arith.subf %0, %17 : vector<2x4x16xf32>
    %19 = vector.broadcast %16 : vector<2x1x16xf32> to vector<2x4x16xf32>
    %20 = arith.mulf %18, %19 : vector<2x4x16xf32>
    %c0_7 = arith.constant 0 : index
    %c0_8 = arith.constant 0 : index
    %c0_9 = arith.constant 0 : index
    %21 = vector.load %arg3[%c0_7, %c0_8, %c0_9] : memref<1x4x1xf32, #tpu.memory_space<vmem>>, vector<1x4x1xf32>
    %22 = vector.broadcast %21 : vector<1x4x1xf32> to vector<2x4x16xf32>
    %23 = arith.mulf %20, %22 : vector<2x4x16xf32>
    %c0_10 = arith.constant 0 : index
    %c0_11 = arith.constant 0 : index
    %c0_12 = arith.constant 0 : index
    %24 = vector.load %arg4[%c0_10, %c0_11, %c0_12] : memref<1x4x1xf32, #tpu.memory_space<vmem>>, vector<1x4x1xf32>
    %25 = vector.broadcast %24 : vector<1x4x1xf32> to vector<2x4x16xf32>
    %26 = arith.addf %23, %25 : vector<2x4x16xf32>
    %c0_13 = arith.constant 0 : index
    %c0_14 = arith.constant 0 : index
    %c0_15 = arith.constant 0 : index
    %27 = vector.load %arg5[%c0_13, %c0_14, %c0_15] : memref<2x4x16xf32, #tpu.memory_space<vmem>>, vector<2x4x16xf32>
    tpu.vector_store %arg5[%c0_13, %c0_14, %c0_15], %26 {strides = array<i32>} : memref<2x4x16xf32, #tpu.memory_space<vmem>>, vector<2x4x16xf32>,
    return
  }
  func.func @transform_0(%arg0: i32, %arg1: i32) -> (i32, i32, i32) {
    %c0_i32 = arith.constant 0 : i32
    %c0_i32_0 = arith.constant 0 : i32
    return %arg0, %c0_i32, %arg1 : i32, i32, i32
  }
  func.func @transform_1(%arg0: i32, %arg1: i32) -> (i32, i32, i32) {
    %c0_i32 = arith.constant 0 : i32
    %c0_i32_0 = arith.constant 0 : i32
    %c0_i32_1 = arith.constant 0 : i32
    %c0_i32_2 = arith.constant 0 : i32
    return %c0_i32, %c0_i32_0, %c0_i32_1 : i32, i32, i32
  }
  func.func @transform_2(%arg0: i32, %arg1: i32) -> (i32, i32, i32) {
    %c0_i32 = arith.constant 0 : i32
    %c0_i32_0 = arith.constant 0 : i32
    %c0_i32_1 = arith.constant 0 : i32
    %c0_i32_2 = arith.constant 0 : i32
    return %c0_i32, %c0_i32_0, %c0_i32_1 : i32, i32, i32
  }
  func.func @transform_3(%arg0: i32, %arg1: i32) -> (i32, i32, i32) {
    %c0_i32 = arith.constant 0 : i32
    %c0_i32_0 = arith.constant 0 : i32
    return %arg0, %c0_i32, %arg1 : i32, i32, i32
  }
}

</mosaic_0001>

<bundles_post_ra>
// kernel: tpu_custom_call.1
= control target key start
LH: loop header
LB: loop body
LE: loop exit
PB: predicated region body
PF: predicated region fallthrough
CT: control target
= control target key end

     0   :  { %v134_v1 = vmov 0   ;;  %s188_s0 = inlined_call_operand.vmem [shape: f32[2,4,16], index: 0, kind: input, shape index: {}]   ;;  %s189_s1 = inlined_call_operand.vmem [shape: f32[1,4,1], index: 1, kind: input, shape index: {}]   ;;  %s190_s2 = inlined_call_operand.vmem [shape: f32[1,4,1], index: 2, kind: input, shape index: {}]   ;;  %s191_s3 = inlined_call_operand.hbm [shape: f32[2,4,16], index: 3, kind: output, shape index: {}]  }
   0x1   :  { %v67_v0 = vld [vmem:[%s189_s1] sm:$0xf]  ;;  %105 = vset.pattern.permute.xlu0 %v134_v1 }
   0x2   :  { %8 = vsyncpa [#allocation3], 0  ;;  %70 = vperm.xlu0 %105, %v67_v0   ;;  %v75_v2 = vld [vmem:[%s190_s2] sm:$0xf]  ;;  %vm17_vm0 = vcmask 125952  }
   0x3   :  { %v15_v3 = vld [vmem:[%s188_s0] sm:$0xf]  ;;  %v16_v4 = vld [vmem:[%s188_s0 + $0x4] sm:$0xf]  ;;  %s135_s0 = smov [#allocation2]  }
   0x4   :  { %v18_v5 = vsel %vm17_vm0, %v15_v3, 0.0  ;;  %v35_v6 = vmul.f32 %v15_v3, %v15_v3  ;;  %v25_v7 = vsel %vm17_vm0, %v16_v4, 0.0  ;;  %v36_v8 = vmul.f32 %v16_v4, %v16_v4  ;;  %s90_s1 = sshll.u32 %s135_s0, 4  ;;  %s91_s1 = int_to_ptr.vmem [resolvable:$true] %s90_s1 }
   0x5   :  { %v19_v9 = vrot.slane %v18_v5, 4  ;;  %v26_v10 = vrot.slane %v25_v7, 4  ;;  %s110_s2 = scalar_lea.vmem %s91_s1, 128  ;;  %p115_p1 = scmp.lt.s32.totalorder %s91_s1, %s91_s1 }
   0x6   :  { %78 = vperm.xlu0 %105, %v75_v2   ;;  %v37_v11 = vsel %vm17_vm0, %v35_v6, 0.0  ;;  %v44_v12 = vsel %vm17_vm0, %v36_v8, 0.0  ;;  %p111_p0 = scmp.ne.s32.totalorder %s91_s1, %s110_s2  ;;  %p116_p2 = scmp.lt.s32.totalorder %s110_s2, %s110_s2 }
   0x7   :  { %v20_v13 = vadd.f32 %v19_v9, %v18_v5  ;;  %v38_v14 = vrot.slane %v37_v11, 4  ;;  %v27_v15 = vadd.f32 %v26_v10, %v25_v7  ;;  %v45_v16 = vrot.slane %v44_v12, 4 }
   0x8   :  { %p117_p3 = por %p116_p2, %p115_p1 }
   0x9   :  { %v21_v17 = vrot.slane %v20_v13, 2  ;;  %v39_v18 = vadd.f32 %v38_v14, %v37_v11  ;;  %v28_v19 = vrot.slane %v27_v15, 2  ;;  %v46_v20 = vadd.f32 %v45_v16, %v44_v12 }
   0xa   :  { %p118_p4 = pnand %p117_p3, %p111_p0 }
   0xb   :  { %v22_v21 = vadd.f32 %v21_v17, %v20_v13  ;;  %v40_v22 = vrot.slane %v39_v18, 2  ;;  %v29_v23 = vadd.f32 %v28_v19, %v27_v15  ;;  %v47_v24 = vrot.slane %v46_v20, 2 }
   0xd   :  { %v23_v25 = vrot.slane %v22_v21, 1  ;;  %v41_v26 = vadd.f32 %v40_v22, %v39_v18  ;;  %v30_v27 = vrot.slane %v29_v23, 1  ;;  %v48_v28 = vadd.f32 %v47_v24, %v46_v20 }
   0xf   :  { %v24_v29 = vadd.f32 %v23_v25, %v22_v21  ;;  %v42_v30 = vrot.slane %v41_v26, 1  ;;  %v31_v31 = vadd.f32 %v30_v27, %v29_v23  ;;  %v49_v32 = vrot.slane %v48_v28, 1 }
  0x11   :  { %v33_v33 = vmul.f32 0.25, %v24_v29  ;;  %v43_v34 = vadd.f32 %v42_v30, %v41_v26  ;;  %v34_v35 = vmul.f32 0.25, %v31_v31  ;;  %v50_v36 = vadd.f32 %v49_v32, %v48_v28 }
  0x13   :  { %v51_v37 = vmul.f32 0.25, %v43_v34  ;;  %v53_v38 = vmul.f32 %v33_v33, %v33_v33  ;;  %v52_v39 = vmul.f32 0.25, %v50_v36  ;;  %v54_v40 = vmul.f32 %v34_v35, %v34_v35 }
  0x14   :  { %v63_v48 = vsub.f32 %v15_v3, %v33_v33  ;;  %v64_v49 = vsub.f32 %v16_v4, %v34_v35 }
  0x15   :  { %v55_v41 = vsub.f32 %v51_v37, %v53_v38  ;;  %v56_v42 = vsub.f32 %v52_v39, %v54_v40 }
  0x17   :  { %v57_v43 = vmax.f32 %v55_v41, 0.0  ;;  %v58_v44 = vmax.f32 %v56_v42, 0.0 }
  0x19   :  { %v59_v45 = vadd.f32 1e-05, %v57_v43  ;;  %v60_v46 = vadd.f32 1e-05, %v58_v44 }
  0x1b   :  { %106 = vrsqrt.f32 %v59_v45 }
  0x1c   :  { %108 = vrsqrt.f32 %v60_v46 }
  0x25   :  { %v107_v47 = vpop.eup %106 }
  0x26   :  { %v109_v50 = vpop.eup %108  ;;  %v65_v51 = vmul.f32 %v107_v47, %v63_v48 }
  0x27   :  { %v66_v52 = vmul.f32 %v109_v50, %v64_v49 }
  0x81   :  { %v71_v53 = vpop.permute.xlu0 %70 }
  0x82   :  { %v73_v54 = vmul.f32 %v71_v53, %v65_v51  ;;  %v74_v55 = vmul.f32 %v71_v53, %v66_v52 }
  0x85   :  { %v79_v56 = vpop.permute.xlu0 %78 }
  0x86   :  { %v81_v57 = vadd.f32 %v79_v56, %v73_v54  ;;  %v82_v58 = vadd.f32 %v79_v56, %v74_v55 }
  0x88   :  { %83 = vst.msk [vmem:[#allocation2] sm:$0xf] %vm17_vm0, %v81_v57  ;;  %84 = vst.msk [vmem:[#allocation2 + $0x4] sm:$0xf] %vm17_vm0, %v82_v58 }
  0x89   :  { %121 = shalt.err (!%p118_p4)
}
  0x8a   :  { %s122_s22 = scalar_lea.hbm %s191_s3, 128 }
  0x8b   :  { %p123_p5 = scmp.ne.s32.totalorder %s191_s3, %s122_s22  ;;  %p126_p6 = scmp.lt.u32.totalorder %s122_s22, %s191_s3 }
  0x8d   :  { %p128_p7 = pnand %p126_p6, %p123_p5 }
  0x8f   :  { %131 = shalt.err (!%p128_p7)
}
  0x90   :  { %s136_s27 = smov 64   ;;  %s137_s28 = smov 4  }
  0x91   :  { %96 = dma.vmem_to_hbm [thread:$0]  %s91_s1, 128, %s191_s3, [#allocation3], %s136_s27, %s136_s27, %s137_s28  }
  0x92   :  { %132 = dma.done.wait [#allocation3], 128  }
  0x93   :  { %133 = vsyncadd [#allocation3], 4294967168 }
  0x94   :  { %100 = vsyncpa [#allocation3], 1 }

</bundles_post_ra>
